<compile_context>
chip_gen: v6e
topology: v6e:2x2x1
jax: 0.10.0
libtpu: 0.0.40
codegen_flags: <defaults>
</compile_context>

<pallas_src>
import functools

import jax
import jax.numpy as jnp
from jax.experimental import pallas as pl
from jax.experimental.pallas import tpu as pltpu


def se_fusion_kernel(x_ref, p_ref, o_ref, *, cin, c2, chid):
    # x_ref: (block_b, Cin, HW)   p_ref: (C2, Cin+C2+Chid+3)   o_ref: (block_b, C2, HW)
    block_b = x_ref.shape[0]
    hw = x_ref.shape[-1]
    inv_hw = 1.0 / hw                                            # static constant

    # Unpack the single packed parameter tile (rows = C2, zero-padded where needed).
    p = p_ref[...]
    off = 0
    w_cat = p[:, off:off + cin]; off += cin                      # (C2, Cin) fused conv1|conv2
    b_cat = p[:, off:off + 1];   off += 1                        # (C2, 1)
    wf1_t = p[:chid, off:off + c2]; off += c2                    # (Chid, C2)
    bf1_c = p[:chid, off:off + 1];  off += 1                     # (Chid, 1)
    wf2_t = p[:, off:off + chid];   off += chid                  # (C2, Chid)
    bf2_c = p[:, off:off + 1]                                    # (C2, 1)

    # ---- Squeeze + excitation, decoupled from the conv via linearity ----
    # mean_hw(W x + b) == W mean_hw(x) + b, so pool x directly and run the whole
    # excitation for all block_b images in one set of tiny matmuls.  This chain
    # overlaps with the big conv matmuls below instead of waiting on them.
    xm = jnp.sum(x_ref[...], axis=-1) * inv_hw                   # (block_b, Cin)
    pooled = jax.lax.dot_general(                                # == w_cat @ xm.T
        w_cat, xm, (((1,), (1,)), ((), ())),
        preferred_element_type=jnp.float32) + b_cat              # (C2, block_b)
    z = jnp.maximum(
        jnp.dot(wf1_t, pooled, preferred_element_type=jnp.float32) + bf1_c,
        0.0)                                                     # (Chid, block_b)
    a = jax.nn.sigmoid(
        jnp.dot(wf2_t, z, preferred_element_type=jnp.float32) + bf2_c)  # (C2, block_b)

    # ---- Fused 1x1 convs + channel-wise rescale, lane-dense stores ----
    for b in range(block_b):                                     # static, block_b <= 8
        rb = jnp.dot(w_cat, x_ref[b],
                     preferred_element_type=jnp.float32) + b_cat  # (C2, HW)
        o_ref[b] = (rb * a[:, b:b + 1]).astype(o_ref.dtype)       # (C2, HW)


def _round_up(n, m):
    return ((n + m - 1) // m) * m


def _vmem_budget_bytes():
    # Leave headroom for compiler-internal scratch: ~48 MiB on v7x (64 MiB/TC),
    # ~96 MiB on v5e/v6e (128 MiB).
    cap = 64 * 1024 * 1024
    try:
        cap = int(pltpu.get_tpu_info().vmem_capacity_bytes)
    except Exception:
        pass
    return min(int(cap * 0.75), 100 * 1024 * 1024)


def _pick_block_b(batch, cin, c2, hw, budget_bytes):
    cin_p = _round_up(cin, 8)
    c2_p = _round_up(c2, 8)
    hw_p = _round_up(hw, 128)
    # Double-buffered x/out blocks + live f32 rb intermediates, per image.
    per_img = 4 * hw_p * (2 * cin_p + 3 * c2_p)
    cap = max(1, budget_bytes // per_img)
    cap = min(cap, 8, batch)            # 8: keep the unrolled loop's vreg pressure bounded
    block_b = 1
    for cand in range(cap, 0, -1):
        if batch % cand == 0:
            block_b = cand
            break
    # Only pay extra grid steps (v7x megacore sharding) when a step is big enough
    # to amortize the ~0.35us/step pipeline overhead.
    step_bytes = 4 * hw_p * block_b * (cin_p + c2_p)
    if batch // block_b == 1 and batch > 1 and step_bytes >= (2 << 20):
        for cand in range(block_b // 2, 0, -1):
            if batch % cand == 0:
                block_b = cand
                break
    return block_b


def se_fusion_forward(x_nchw, params, *, block_b=None):
    B, Cin, H, W = x_nchw.shape
    HW = H * W
    Cout = params["w1"].shape[1]
    C2 = 2 * Cout
    Chid = params["wf1"].shape[1]

    # NCHW -> (B, Cin, HW): pure reshape (channels-on-sublanes), no HBM transpose.
    x = x_nchw.reshape(B, Cin, HW)

    # Fuse model1/model2 1x1 convs into one weight/bias and pack ALL small params
    # into one (C2, Cin+C2+Chid+3) tile -> single BlockSpec / single DMA per step.
    w_cat = jnp.concatenate([params["w1"].T, params["w2"].T], axis=0)   # (C2, Cin)
    b_cat = jnp.concatenate([params["b1"], params["b2"]], axis=1).T     # (C2, 1)
    wf1_t = params["wf1"].T                                             # (Chid, C2)
    bf1_c = params["bf1"].T                                             # (Chid, 1)
    wf2_t = params["wf2"].T                                             # (C2, Chid)
    bf2_c = params["bf2"].T                                             # (C2, 1)

    def pad_rows(a):
        return jnp.pad(a, ((0, C2 - a.shape[0]), (0, 0)))

    packed = jnp.concatenate(
        [w_cat, b_cat, pad_rows(wf1_t), pad_rows(bf1_c), wf2_t, bf2_c],
        axis=1).astype(jnp.float32)                                     # (C2, P)

    budget = _vmem_budget_bytes()
    if block_b is None:
        block_b = _pick_block_b(B, Cin, C2, HW, budget)
    assert B % block_b == 0
    grid = (B // block_b,)

    kernel = functools.partial(se_fusion_kernel, cin=Cin, c2=C2, chid=Chid)

    out = pl.pallas_call(
        kernel,
        grid=grid,
        in_specs=[
            pl.BlockSpec((block_b, Cin, HW), lambda i: (i, 0, 0)),
            pl.BlockSpec(packed.shape, lambda i: (0, 0)),
        ],
        out_specs=pl.BlockSpec((block_b, C2, HW), lambda i: (i, 0, 0)),
        out_shape=jax.ShapeDtypeStruct((B, C2, HW), jnp.float32),
        compiler_params=pltpu.CompilerParams(
            dimension_semantics=("parallel",),
            vmem_limit_bytes=int(budget)),
    )(x, packed)

    # (B, C2, HW) -> NCHW: free reshape, no transpose.
    return out.reshape(B, C2, H, W)


def se_fusion_reference(x_nchw, params):
    x = jnp.transpose(x_nchw, (0, 2, 3, 1))                             # (B,H,W,Cin)
    s1 = x @ params["w1"] + params["b1"]
    s2 = x @ params["w2"] + params["b2"]
    r = jnp.concatenate([s1, s2], axis=-1)                              # (B,H,W,2C)
    pooled = r.mean(axis=(1, 2))                                        # (B,2C)
    z = jnp.maximum(pooled @ params["wf1"] + params["bf1"], 0.0)
    a = jax.nn.sigmoid(z @ params["wf2"] + params["bf2"])
    out = r * a[:, None, None, :]
    return jnp.transpose(out, (0, 3, 1, 2))


def make_params(key, in_channels=3, out_channels=5):
    C2 = 2 * out_channels
    Chid = C2 // 2  # SE reduction ratio 2
    ks = jax.random.split(key, 8)
    scale = 0.1
    return {
        "w1": scale * jax.random.normal(ks[0], (in_channels, out_channels), jnp.float32),
        "b1": scale * jax.random.normal(ks[1], (1, out_channels), jnp.float32),
        "w2": scale * jax.random.normal(ks[2], (in_channels, out_channels), jnp.float32),
        "b2": scale * jax.random.normal(ks[3], (1, out_channels), jnp.float32),
        "wf1": scale * jax.random.normal(ks[4], (C2, Chid), jnp.float32),
        "bf1": scale * jax.random.normal(ks[5], (1, Chid), jnp.float32),
        "wf2": scale * jax.random.normal(ks[6], (Chid, C2), jnp.float32),
        "bf2": scale * jax.random.normal(ks[7], (1, C2), jnp.float32),
    }


if __name__ == "__main__":
    B, Cin, H, W = 2, 3, 16, 16
    key = jax.random.PRNGKey(0)
    k_x, k_p = jax.random.split(key)
    x = jax.random.normal(k_x, (B, Cin, H, W), jnp.float32)
    params = make_params(k_p, in_channels=Cin, out_channels=5)

    out = se_fusion_forward(x, params)
    out = jax.block_until_ready(out)

    ref = se_fusion_reference(x, params)
    assert out.shape == (B, 10, H, W), out.shape
    assert jnp.allclose(out, ref, atol=2e-5, rtol=2e-5), "mismatch vs reference"

    print("KERNEL_OK")
</pallas_src>

<mosaic_0001>
module attributes {stable_mosaic.version = 11 : i64} {
  func.func @se_fusion_kernel(%arg0: i32, %arg1: memref<2x3x256xf32, #tpu.memory_space<vmem>>, %arg2: memref<10x21xf32, #tpu.memory_space<vmem>>, %arg3: memref<2x10x256xf32, #tpu.memory_space<vmem>>) attributes {dimension_semantics = [#tpu.dimension_semantics<parallel>], iteration_bounds = array<i64: 1>, scalar_prefetch = 0 : i64, scratch_operands = 0 : i64, tpu.core_type = #tpu.core_type<tc>, window_params = [{transform_indices = @transform_0, window_bounds = array<i64: 2, 3, 256>}, {pipeline_mode = #tpu.pipeline_mode<synchronous>, transform_indices = @transform_1, window_bounds = array<i64: 10, 21>}, {transform_indices = @transform_2, window_bounds = array<i64: 2, 10, 256>}]} {
    %c0 = arith.constant 0 : index
    %c0_0 = arith.constant 0 : index
    %0 = vector.load %arg2[%c0, %c0_0] : memref<10x21xf32, #tpu.memory_space<vmem>>, vector<10x21xf32>
    %1 = vector.extract_strided_slice %0 {offsets = [0, 0], sizes = [10, 3], strides = [1, 1]} : vector<10x21xf32> to vector<10x3xf32>
    %2 = vector.extract_strided_slice %0 {offsets = [0, 3], sizes = [10, 1], strides = [1, 1]} : vector<10x21xf32> to vector<10x1xf32>
    %3 = vector.extract_strided_slice %0 {offsets = [0, 4], sizes = [5, 10], strides = [1, 1]} : vector<10x21xf32> to vector<5x10xf32>
    %4 = vector.extract_strided_slice %0 {offsets = [0, 14], sizes = [5, 1], strides = [1, 1]} : vector<10x21xf32> to vector<5x1xf32>
    %5 = vector.extract_strided_slice %0 {offsets = [0, 15], sizes = [10, 5], strides = [1, 1]} : vector<10x21xf32> to vector<10x5xf32>
    %6 = vector.extract_strided_slice %0 {offsets = [0, 20], sizes = [10, 1], strides = [1, 1]} : vector<10x21xf32> to vector<10x1xf32>
    %c0_1 = arith.constant 0 : index
    %c0_2 = arith.constant 0 : index
    %c0_3 = arith.constant 0 : index
    %7 = vector.load %arg1[%c0_1, %c0_2, %c0_3] : memref<2x3x256xf32, #tpu.memory_space<vmem>>, vector<2x3x256xf32>
    %cst = arith.constant dense<0.000000e+00> : vector<2x3xf32>
    %8 = vector.multi_reduction <add>, %7, %cst [2] : vector<2x3x256xf32> to vector<2x3xf32>
    %cst_4 = arith.constant 3.906250e-03 : f32
    %9 = vector.broadcast %cst_4 : f32 to vector<2x3xf32>
    %10 = arith.mulf %8, %9 : vector<2x3xf32>
    %cst_5 = arith.constant dense<0.000000e+00> : vector<10x2xf32>
    %11 = tpu.matmul %1, %10, %cst_5 {dimension_numbers = #tpu.dot_dimension_numbers<[1], [1], [0], [0], [0, 0, 1, 0], [], []>} : vector<10x3xf32>, vector<2x3xf32>, vector<10x2xf32> -> vector<10x2xf32>
    %12 = vector.broadcast %2 : vector<10x1xf32> to vector<10x2xf32>
    %13 = arith.addf %11, %12 : vector<10x2xf32>
    %cst_6 = arith.constant dense<0.000000e+00> : vector<5x2xf32>
    %14 = tpu.matmul %3, %13, %cst_6 {dimension_numbers = #tpu.dot_dimension_numbers<[1], [0], [0], [1], [0, 0, 1, 1], [], []>} : vector<5x10xf32>, vector<10x2xf32>, vector<5x2xf32> -> vector<5x2xf32>
    %15 = vector.broadcast %4 : vector<5x1xf32> to vector<5x2xf32>
    %16 = arith.addf %14, %15 : vector<5x2xf32>
    %cst_7 = arith.constant 0.000000e+00 : f32
    %17 = vector.broadcast %cst_7 : f32 to vector<5x2xf32>
    %18 = arith.maximumf %16, %17 : vector<5x2xf32>
    %cst_8 = arith.constant dense<0.000000e+00> : vector<10x2xf32>
    %19 = tpu.matmul %5, %18, %cst_8 {dimension_numbers = #tpu.dot_dimension_numbers<[1], [0], [0], [1], [0, 0, 1, 1], [], []>} : vector<10x5xf32>, vector<5x2xf32>, vector<10x2xf32> -> vector<10x2xf32>
    %20 = vector.broadcast %6 : vector<10x1xf32> to vector<10x2xf32>
    %21 = arith.addf %19, %20 : vector<10x2xf32>
    %22 = arith.negf %21 : vector<10x2xf32>
    %23 = math.exp %22 : vector<10x2xf32>
    %cst_9 = arith.constant 1.000000e+00 : f32
    %24 = vector.broadcast %cst_9 : f32 to vector<10x2xf32>
    %25 = arith.addf %24, %23 : vector<10x2xf32>
    %26 = arith.divf %24, %25 : vector<10x2xf32>
    %c0_10 = arith.constant 0 : index
    %c0_11 = arith.constant 0 : index
    %c0_12 = arith.constant 0 : index
    %27 = vector.load %arg1[%c0_10, %c0_11, %c0_12] : memref<2x3x256xf32, #tpu.memory_space<vmem>>, vector<1x3x256xf32>
    %28 = vector.shape_cast %27 : vector<1x3x256xf32> to vector<3x256xf32>
    %cst_13 = arith.constant dense<0.000000e+00> : vector<10x256xf32>
    %29 = tpu.matmul %1, %28, %cst_13 {dimension_numbers = #tpu.dot_dimension_numbers<[1], [0], [0], [1], [0, 0, 1, 1], [], []>} : vector<10x3xf32>, vector<3x256xf32>, vector<10x256xf32> -> vector<10x256xf32>
    %30 = vector.broadcast %2 : vector<10x1xf32> to vector<10x256xf32>
    %31 = arith.addf %29, %30 : vector<10x256xf32>
    %32 = vector.extract_strided_slice %26 {offsets = [0, 0], sizes = [10, 1], strides = [1, 1]} : vector<10x2xf32> to vector<10x1xf32>
    %33 = vector.broadcast %32 : vector<10x1xf32> to vector<10x256xf32>
    %34 = arith.mulf %31, %33 : vector<10x256xf32>
    %c0_14 = arith.constant 0 : index
    %c0_15 = arith.constant 0 : index
    %c0_16 = arith.constant 0 : index
    %35 = vector.load %arg3[%c0_14, %c0_15, %c0_16] : memref<2x10x256xf32, #tpu.memory_space<vmem>>, vector<1x10x256xf32>
    %36 = vector.shape_cast %35 : vector<1x10x256xf32> to vector<10x256xf32>
    %37 = vector.shape_cast %34 : vector<10x256xf32> to vector<1x10x256xf32>
    tpu.vector_store %arg3[%c0_14, %c0_15, %c0_16], %37 {strides = array<i32>} : memref<2x10x256xf32, #tpu.memory_space<vmem>>, vector<1x10x256xf32>,
    %c1 = arith.constant 1 : index
    %c0_17 = arith.constant 0 : index
    %c0_18 = arith.constant 0 : index
    %38 = vector.load %arg1[%c1, %c0_17, %c0_18] : memref<2x3x256xf32, #tpu.memory_space<vmem>>, vector<1x3x256xf32>
    %39 = vector.shape_cast %38 : vector<1x3x256xf32> to vector<3x256xf32>
    %cst_19 = arith.constant dense<0.000000e+00> : vector<10x256xf32>
    %40 = tpu.matmul %1, %39, %cst_19 {dimension_numbers = #tpu.dot_dimension_numbers<[1], [0], [0], [1], [0, 0, 1, 1], [], []>} : vector<10x3xf32>, vector<3x256xf32>, vector<10x256xf32> -> vector<10x256xf32>
    %41 = vector.broadcast %2 : vector<10x1xf32> to vector<10x256xf32>
    %42 = arith.addf %40, %41 : vector<10x256xf32>
    %43 = vector.extract_strided_slice %26 {offsets = [0, 1], sizes = [10, 1], strides = [1, 1]} : vector<10x2xf32> to vector<10x1xf32>
    %44 = vector.broadcast %43 : vector<10x1xf32> to vector<10x256xf32>
    %45 = arith.mulf %42, %44 : vector<10x256xf32>
    %c1_20 = arith.constant 1 : index
    %c0_21 = arith.constant 0 : index
    %c0_22 = arith.constant 0 : index
    %46 = vector.load %arg3[%c1_20, %c0_21, %c0_22] : memref<2x10x256xf32, #tpu.memory_space<vmem>>, vector<1x10x256xf32>
    %47 = vector.shape_cast %46 : vector<1x10x256xf32> to vector<10x256xf32>
    %48 = vector.shape_cast %45 : vector<10x256xf32> to vector<1x10x256xf32>
    tpu.vector_store %arg3[%c1_20, %c0_21, %c0_22], %48 {strides = array<i32>} : memref<2x10x256xf32, #tpu.memory_space<vmem>>, vector<1x10x256xf32>,
    return
  }
  func.func @transform_0(%arg0: i32) -> (i32, i32, i32) {
    %c0_i32 = arith.constant 0 : i32
    %c0_i32_0 = arith.constant 0 : i32
    %c0_i32_1 = arith.constant 0 : i32
    return %arg0, %c0_i32, %c0_i32_0 : i32, i32, i32
  }
  func.func @transform_1(%arg0: i32) -> (i32, i32) {
    %c0_i32 = arith.constant 0 : i32
    %c0_i32_0 = arith.constant 0 : i32
    %c0_i32_1 = arith.constant 0 : i32
    return %c0_i32, %c0_i32_0 : i32, i32
  }
  func.func @transform_2(%arg0: i32) -> (i32, i32, i32) {
    %c0_i32 = arith.constant 0 : i32
    %c0_i32_0 = arith.constant 0 : i32
    %c0_i32_1 = arith.constant 0 : i32
    return %arg0, %c0_i32, %c0_i32_0 : i32, i32, i32
  }
}

</mosaic_0001>

<bundles_post_ra>
// kernel: tpu_custom_call.1
= control target key start
LH: loop header
LB: loop body
LE: loop exit
PB: predicated region body
PF: predicated region fallthrough
CT: control target
= control target key end

     0   :  { %vm21_vm0 = vcmask 1042432   ;;  %vm58_vm1 = vcmask 23552   ;;  %v617_v12 = vmov 3   ;;  %s618_s17 = smov 124   ;;  %v46_v13 = vlaneseq  ;;  %s733_s0 = inlined_call_operand.vmem [shape: f32[2,3,256], index: 0, kind: input, shape index: {}]   ;;  %s734_s1 = inlined_call_operand.vmem [shape: f32[10,21], index: 1, kind: input, shape index: {}]   ;;  %s735_s2 = inlined_call_operand.vmem [shape: f32[2,10,256], index: 2, kind: output, shape index: {}]  }
   0x1   :  { %v13_v0 = vld [vmem:[%s733_s0] sm:$0x77]  ;;  %v14_v1 = vld [vmem:[%s733_s0 + $0x8] sm:$0x77]  ;;  %598 = vset.pattern.permute.xlu1 %v617_v12  ;;  %vm56_vm2 = vcmask 1041409   ;;  %v619_v24 = vmov 0.0  }
   0x2   :  { %v17_v2 = vcombine.high %v13_v0, %v13_v0  ;;  %v22_v3 = vsel %vm21_vm0, %v13_v0, 0.0  ;;  %v18_v4 = vcombine.high %v14_v1, %v14_v1  ;;  %v27_v6 = vsel %vm21_vm0, %v14_v1, 0.0  ;;  %v654_v10 = vld [vmem:[%s734_s1] sm:$0xff]  ;;  %v661_v11 = vld [vmem:[%s734_s1 + $0x8] sm:$0x3]  ;;  %577 = vmatprep.subr.mxu1 %v619_v24  ;;  %s622_s1 = smov 113  }
   0x3   :  { %574 = vmatprep.mubr.msk.f32.mxu0 %vm58_vm1, %v654_v10  ;;  %41 = vperm.xlu1 %598, %v661_v11   ;;  %v47_v14 = vand.u32 127, %v46_v13  ;;  %v49_v15 = vshrl.u32 %v46_v13, 7  ;;  %vm620_vm3 = vmmov 0   ;;  %v621_v25 = vmov 14   ;;  %v332_v27 = vld [vmem:[%s733_s0] sm:$0x77] }
   0x4   :  { %v23_v5 = vsel %vm21_vm0, %v17_v2, 0.0  ;;  %v28_v7 = vsel %vm21_vm0, %v18_v4, 0.0  ;;  %581 = vmatprep.mubr.msk.f32.mxu1 %vm620_vm3, %v619_v24  ;;  %vm149_vm4 = vcmask 1041408   ;;  %v334_v32 = vcombine.high %v332_v27, %v332_v27  ;;  %v554_v39 = vld [vmem:[%s733_s0 + $0x8] sm:$0x77] }
   0x5   :  { %v24_v8 = vadd.f32 %v23_v5, %v22_v3  ;;  %v29_v9 = vadd.f32 %v28_v7, %v27_v6  ;;  %v50_v17 = vsub.s32 %v47_v14, %v49_v15  ;;  %vm146_vm5 = vcmask 80896  }
   0x6   :  { %vm236_vm6 = vcmask 39936   ;;  %v623_v37 = vmov 20   ;;  %vm241_vm7 = vcmask 1044480   ;;  %v437_v43 = vcombine.high %v554_v39, %v554_v39 }
   0x7   :  { %25 = vadd.xlane.f32.xlu0 %v24_v8  ;;  %36 = vperm.xlu1 %598, %v654_v10   ;;  %v624_v45 = vmov 0   ;;  %v625_v60 = vmov 1  }
   0x8   :  { %602 = vset.pattern.permute.xlu0 %v624_v45 }
   0xb   :  { %30 = vadd.xlane.f32.xlu0 %v29_v9  ;;  %599 = vset.pattern.permute.xlu1 %v621_v25 }
   0xc   :  { %141 = vperm.xlu1 %599, %v654_v10  }
  0x10   :  { %232 = vrot.lane.b32.xlu1 %v654_v10, %s622_s1 }
  0x11   :  { %600 = vset.pattern.permute.xlu1 %v623_v37 }
  0x14   :  { %234 = vrot.lane.b32.xlu1 %v661_v11, %s622_s1 }
  0x18   :  { %225 = vperm.xlu1 %600, %v654_v10  }
  0x1c   :  { %229 = vperm.xlu1 %600, %v661_v11  }
  0x20   :  { %601 = vset.pattern.permute.xlu1 %v624_v45 }
  0x21   :  { %144 = vrot.lane.b32.xlu0 %v654_v10, %s618_s17 }
  0x7e   :  { %v673_v26 = vpop.permute.xlu1 %41 }
  0x82   :  { %v679_v30 = vpop.permute.xlu1 %36 }
  0x87   :  { %v142_v35 = vpop.permute.xlu1 %141 }
  0x8b   :  { %v233_v36 = vpop.permute.xlu1 %232 }
  0x8f   :  { %v235_v44 = vpop.permute.xlu1 %234 }
  0x90   :  { %v26_v16 = vpop.xlane.xlu0 %25 }
  0x91   :  { %v32_v18 = vmul.f32 0.00390625, %v26_v16 }
  0x93   :  { %v51_v21 = vrot.slane %v32_v18, %v50_v17  ;;  %v226_v46 = vpop.permute.xlu1 %225 }
  0x94   :  { %v31_v19 = vpop.xlane.xlu0 %30 }
  0x95   :  { %v33_v20 = vmul.f32 0.00390625, %v31_v19 }
  0x97   :  { %v55_v22 = vrot.slane %v33_v20, %v50_v17  ;;  %v230_v47 = vpop.permute.xlu1 %229 }
  0x98   :  { %v145_v34 = vpop.permute.xlu0 %144 }
  0x99   :  { %v57_v23 = vsel %vm56_vm2, %v55_v22, %v51_v21 }
  0x9a   :  { %572 = vmatprep.subr.msk.mxu0 %vm58_vm1, %v57_v23 }
  0x9b   :  { %573 = vmatpush3.xpose.msk.msra.mxu0 %vm58_vm1, %v57_v23 }
  0x9e   :  { %575 = vmatmul.mubr.msk.f32.vlgmr.msra.gmra.mxu0 %vm58_vm1, %v661_v11 }
  0x9f   :  { %586 = vmatprep.mubr.msk.f32.mxu0 %vm236_vm6, %v233_v36 }
 0x15e   :  { %v576_v28 = vpop.f32.mrf.mxu0 }
 0x15f   :  { %v137_v29 = vadd.f32 %v576_v28, %v673_v26 }
 0x160   :  { %v131_v31 = vpop.f32.mrf.mxu0 }
 0x161   :  { %v132_v33 = vadd.f32 %v131_v31, %v679_v30  ;;  %578 = vmatpush3.msk.msra.mxu1 %vm149_vm4, %v137_v29 }
 0x162   :  { %579 = vmatprep.subr.mxu1 %v619_v24 }
 0x163   :  { %580 = vmatpush3.msra.mxu1 %v132_v33 }
 0x164   :  { %582 = vmatmul.mubr.msk.f32.vlgmr.msra.gmra.mxu1 %vm146_vm5, %v145_v34  ;;  %550 = vmatprep.subr.msk.mxu1 %vm21_vm0, %v334_v32 }
 0x165   :  { %551 = vmatpush1.msk.msra.mxu1 %vm21_vm0, %v332_v27  ;;  %403 = vmatprep.mubr.f32.mxu1 %v619_v24 }
 0x168   :  { %552 = vmatmul.mubr.msk.f32.vlgmr.msra.gmra.mxu1 %vm58_vm1, %v654_v10 }
 0x169   :  { %409 = vmatprep.mubr.f32.mxu1 %v619_v24 }
 0x16c   :  { %553 = vmatmul.mubr.msk.f32.gmra.mxu1 %vm58_vm1, %v661_v11 }
 0x224   :  { %v219_v38 = vpop.f32.mrf.mxu1 }
 0x225   :  { %v220_v40 = vadd.f32 %v219_v38, %v142_v35 }
 0x226   :  { %v583_v41 = vpop.f32.mrf.mxu1 }
 0x227   :  { %v223_v42 = vmax.f32 %v220_v40, 0.0 }
 0x228   :  { %v405_v61 = vpop.f32.mrf.mxu1 }
 0x229   :  { %584 = vmatprep.subr.msk.mxu0 %vm241_vm7, %v223_v42  ;;  %v406_v6 = vadd.f32 %v405_v61, %v679_v30 }
 0x22a   :  { %585 = vmatpush3.msk.msra.mxu0 %vm241_vm7, %v223_v42  ;;  %v407_v62 = vpop.f32.mrf.mxu1 }
 0x22b   :  { %587 = vmatmul.mubr.msk.f32.vlgmr.msra.gmra.mxu0 %vm236_vm6, %v235_v44  ;;  %555 = vmatprep.subr.msk.mxu0 %vm21_vm0, %v437_v43  ;;  %v408_v7 = vadd.f32 %v407_v62, %v679_v30 }
 0x22c   :  { %556 = vmatpush1.msk.msra.mxu0 %vm21_vm0, %v554_v39  ;;  %506 = vmatprep.mubr.f32.mxu0 %v619_v24  ;;  %v411_v63 = vpop.f32.mrf.mxu1 }
 0x22d   :  { %v412_v2 = vadd.f32 %v411_v63, %v673_v26 }
 0x22e   :  { %v413_v1 = vpop.f32.mrf.mxu1 }
 0x22f   :  { %557 = vmatmul.mubr.msk.f32.vlgmr.msra.gmra.mxu0 %vm58_vm1, %v654_v10  ;;  %v414_v3 = vadd.f32 %v413_v1, %v673_v26 }
 0x230   :  { %512 = vmatprep.mubr.f32.mxu0 %v619_v24 }
 0x233   :  { %558 = vmatmul.mubr.msk.f32.gmra.mxu0 %vm58_vm1, %v661_v11 }
 0x2eb   :  { %v588_v48 = vpop.f32.mrf.mxu0 }
 0x2ec   :  { %v317_v49 = vadd.f32 %v588_v48, %v230_v47 }
 0x2ed   :  { %v311_v50 = vpop.f32.mrf.mxu0 }
 0x2ee   :  { %v549_v51 = vmul.f32 -1.442695, %v317_v49  ;;  %v312_v52 = vadd.f32 %v311_v50, %v226_v46 }
 0x2ef   :  { %v508_v0 = vpop.f32.mrf.mxu0 }
 0x2f0   :  { %609 = vpow2.f32 %v549_v51  ;;  %v548_v53 = vmul.f32 -1.442695, %v312_v52  ;;  %v509_v14 = vadd.f32 %v508_v0, %v679_v30 }
 0x2f1   :  { %v510_v4 = vpop.f32.mrf.mxu0 }
 0x2f2   :  { %611 = vpow2.f32 %v548_v53  ;;  %v511_v15 = vadd.f32 %v510_v4, %v679_v30 }
 0x2f3   :  { %v514_v11 = vpop.f32.mrf.mxu0 }
 0x2f4   :  { %v515_v20 = vadd.f32 %v514_v11, %v673_v26 }
 0x2f5   :  { %v516_v16 = vpop.f32.mrf.mxu0 }
 0x2f6   :  { %v517_v21 = vadd.f32 %v516_v16, %v673_v26 }
 0x2fd   :  { %v610_v54 = vpop.eup %609 }
 0x2fe   :  { %v327_v55 = vadd.f32 1.0, %v610_v54 }
 0x2ff   :  { %v612_v56 = vpop.eup %611 }
 0x300   :  { %613 = vrcp.f32 %v327_v55  ;;  %v326_v57 = vadd.f32 1.0, %v612_v56 }
 0x302   :  { %615 = vrcp.f32 %v326_v57 }
 0x30d   :  { %v614_v58 = vpop.eup %613 }
 0x30e   :  { %423 = vperm.xlu0 %602, %v614_v58  }
 0x30f   :  { %v616_v59 = vpop.eup %615 }
 0x310   :  { %418 = vperm.xlu1 %601, %v616_v59  }
 0x312   :  { %604 = vset.pattern.permute.xlu0 %v625_v60 }
 0x314   :  { %603 = vset.pattern.permute.xlu1 %v625_v60 }
 0x315   :  { %520 = vperm.xlu1 %603, %v616_v59  }
 0x319   :  { %524 = vperm.xlu1 %603, %v614_v58  }
 0x389   :  { %v424_v5 = vpop.permute.xlu0 %423 }
 0x38a   :  { %v428_v8 = vmul.f32 %v424_v5, %v412_v2  ;;  %v429_v9 = vmul.f32 %v424_v5, %v414_v3 }
 0x38b   :  { %v419_v10 = vpop.permute.xlu1 %418 }
 0x38c   :  { %432 = vst [vmem:[%s735_s2 + $0x10] sm:$0x3] %v428_v8  ;;  %433 = vst [vmem:[%s735_s2 + $0x18] sm:$0x3] %v429_v9  ;;  %v426_v12 = vmul.f32 %v419_v10, %v406_v6  ;;  %v427_v13 = vmul.f32 %v419_v10, %v408_v7 }
 0x38e   :  { %430 = vst [vmem:[%s735_s2] sm:$0xff] %v426_v12  ;;  %431 = vst [vmem:[%s735_s2 + $0x8] sm:$0xff] %v427_v13 }
 0x390   :  { %v521_v17 = vpop.permute.xlu1 %520 }
 0x391   :  { %v527_v18 = vmul.f32 %v521_v17, %v509_v14  ;;  %v528_v19 = vmul.f32 %v521_v17, %v511_v15 }
 0x393   :  { %559 = vst [vmem:[%s735_s2 + $0x20] sm:$0xff] %v527_v18  ;;  %560 = vst [vmem:[%s735_s2 + $0x28] sm:$0xff] %v528_v19 }
 0x394   :  { %v525_v22 = vpop.permute.xlu1 %524 }
 0x395   :  { %v529_v23 = vmul.f32 %v525_v22, %v515_v20  ;;  %v530_v24 = vmul.f32 %v525_v22, %v517_v21 }
 0x397   :  { %561 = vst [vmem:[%s735_s2 + $0x30] sm:$0x3] %v529_v23  ;;  %562 = vst [vmem:[%s735_s2 + $0x38] sm:$0x3] %v530_v24 }

</bundles_post_ra>
